<compile_context>
chip_gen: v5e
topology: v5e:2x2
jax: 0.10.0
libtpu: 0.0.40
codegen_flags: <defaults>
</compile_context>

<pallas_src>
import functools
import math

import jax
import jax.numpy as jnp
from jax import lax
from jax.experimental import pallas as pl
from jax.experimental.pallas import tpu as pltpu


def _dualconv_kernel(x_ref, w_ref, o_ref, xs_ref, *, Wp):
    """One batch image per grid step.

    x_ref  : (1, C, Sp2)  zero-padded, spatially-flattened input for image n,
                          Sp2 = (H+2)*(W+2) + 2 (one extra pad element at each
                          end of the flat axis so all 9 tap shifts are
                          in-bounds static slices).
    w_ref  : (O, 9*C)     fused per-tap weight (1x1 pwc folded into tap (1,1)).
    o_ref  : (1, O, S)    lane-dense "extended" output, S = H*(W+2); the two
                          garbage columns per row are dropped in the wrapper.
    xs_ref : (9*C, S)     VMEM scratch: lane-dense im2col slab.
    """
    C = x_ref.shape[1]
    S = xs_ref.shape[1]

    # Build the lane-dense im2col slab: one (C, S) row block per tap.  Each
    # tap is a static lane-shifted slice of the flat padded input -- full-lane
    # stores into xs, no transposes, no masked width-C column writes.
    for dy in range(3):
        for dx in range(3):
            k = dy * 3 + dx
            off = dy * Wp + dx                      # flat shift of this tap
            xs_ref[k * C:(k + 1) * C, :] = x_ref[0, :, off:off + S]

    # Single MXU pass in the native orientation: (O,9C) @ (9C,S) -> (O,S),
    # accumulating in f32 regardless of the (possibly bf16) storage dtype.
    out = lax.dot_general(
        w_ref[...], xs_ref[...],
        dimension_numbers=(((1,), (0,)), ((), ())),
        preferred_element_type=jnp.float32)
    o_ref[...] = out[None].astype(o_ref.dtype)


def _fused_weight(w_gc, w_pwc, groups):
    """(O, C//g, 3, 3) grouped weight + (O, C, 1, 1) pointwise -> (O, 9*C).

    Column index = (dy*3 + dx)*C + c; the 1x1 pwc is folded into the centre
    tap (dy=dx=1).  Dense block-diagonal expansion of the grouped weight
    (fine for small C; see TODO at top for large C).
    """
    O, Cg = w_gc.shape[0], w_gc.shape[1]
    C = Cg * groups
    Og = O // groups
    idx = jnp.arange(groups)
    w_bd = jnp.zeros((groups, Og, groups, Cg, 3, 3), w_gc.dtype)
    w_bd = w_bd.at[idx, :, idx].set(w_gc.reshape(groups, Og, Cg, 3, 3))
    w_dense = w_bd.reshape(O, C, 3, 3)
    w2 = jnp.transpose(w_dense, (0, 2, 3, 1)).reshape(O, 9 * C)
    return w2.at[:, 4 * C:5 * C].add(w_pwc[:, :, 0, 0].astype(w2.dtype))


def dual_conv(x_nchw, w_gc, w_pwc, *, groups=4, stride=1,
              compute_dtype=jnp.bfloat16):
    """DualConv forward: gc(x) + pwc(x).

    x_nchw : (N, C, H, W)
    w_gc   : (O, C//g, 3, 3)   grouped 3x3 conv weight (no bias)
    w_pwc  : (O, C, 1, 1)      pointwise 1x1 conv weight (no bias)
    compute_dtype : storage dtype for input/weight/im2col (default bf16;
                    MXU accumulation is always f32).  Pass jnp.float32 for a
                    bit-tighter match to the f32 reference.
    returns: (N, O, Ho, Wo) in x_nchw.dtype
    """
    N, C, H, W = x_nchw.shape
    O = w_gc.shape[0]
    assert C % groups == 0 and O % groups == 0
    assert w_gc.shape == (O, C // groups, 3, 3)
    assert w_pwc.shape == (O, C, 1, 1)

    if compute_dtype is None:
        compute_dtype = x_nchw.dtype

    Hp, Wp = H + 2, W + 2
    S = H * Wp                       # flattened "extended" output positions
    Sp2 = Hp * Wp + 2                # flat padded input length (+1 each end)

    w2 = _fused_weight(w_gc, w_pwc, groups).astype(compute_dtype)

    # Single padded input: cast + spatial pad (one fused XLA pass over x),
    # free reshape of the trailing spatial dims, then +1 pad element at each
    # end of the flat axis so every tap shift stays in bounds.
    x_pad = jnp.pad(x_nchw.astype(compute_dtype),
                    ((0, 0), (0, 0), (1, 1), (1, 1)))
    x_flat = jnp.pad(x_pad.reshape(N, C, Hp * Wp), ((0, 0), (0, 0), (1, 1)))

    # Per-step VMEM footprint: double-buffered input & output blocks, resident
    # weight, single im2col scratch.  Budget against the smallest physical
    # VMEM (v7x: 64 MiB) with headroom.
    in_sz = jnp.dtype(compute_dtype).itemsize
    out_sz = jnp.dtype(x_nchw.dtype).itemsize
    footprint = (2 * C * Sp2 * in_sz            # input block x2 buffers
                 + O * 9 * C * in_sz            # weight (grid-invariant)
                 + 2 * O * S * out_sz           # output block x2 buffers
                 + 9 * C * S * in_sz)           # im2col scratch
    if footprint > 32 * 1024 * 1024:
        # TODO(synk): spatial tiling of the flat axis for very large maps.
        raise NotImplementedError(
            f"dual_conv: per-image VMEM footprint {footprint} B too large "
            "for whole-image grid steps; spatial tiling not implemented")
    vmem_limit = int(min(48 * 1024 * 1024,
                         max(16 * 1024 * 1024, 2 * footprint)))

    kernel = functools.partial(_dualconv_kernel, Wp=Wp)

    out_ext = pl.pallas_call(
        kernel,
        out_shape=jax.ShapeDtypeStruct((N, O, S), x_nchw.dtype),
        grid=(N,),
        in_specs=[pl.BlockSpec((1, C, Sp2), lambda n: (n, 0, 0)),
                  pl.BlockSpec((O, 9 * C), lambda n: (0, 0))],
        out_specs=pl.BlockSpec((1, O, S), lambda n: (n, 0, 0)),
        scratch_shapes=[pltpu.VMEM((9 * C, S), compute_dtype)],
        compiler_params=pltpu.CompilerParams(
            dimension_semantics=("parallel",),      # N>=2 -> both v7x TCs busy
            vmem_limit_bytes=vmem_limit),
    )(x_flat, w2)

    # Drop the 2 garbage columns per row (padded-width positions 0 and W+1);
    # reshape is free, the slice is one small XLA pass over the output.
    out = out_ext.reshape(N, O, H, Wp)[:, :, :, 1:W + 1]
    if stride > 1:
        # TODO(synk): strided im2col in-kernel instead of compute-then-subsample.
        out = out[:, :, ::stride, ::stride]
    return out


def dual_conv_ref(x_nchw, w_gc, w_pwc, *, groups=4, stride=1):
    """Pure-JAX reference (lax.conv) matching the PyTorch module."""
    dn = lax.conv_dimension_numbers(x_nchw.shape, w_gc.shape,
                                    ("NCHW", "OIHW", "NCHW"))
    gc = lax.conv_general_dilated(
        x_nchw, w_gc, (stride, stride), ((1, 1), (1, 1)),
        dimension_numbers=dn, feature_group_count=groups)
    pwc = lax.conv_general_dilated(
        x_nchw, w_pwc, (stride, stride), ((0, 0), (0, 0)),
        dimension_numbers=dn)
    return gc + pwc


if __name__ == "__main__":
    key = jax.random.PRNGKey(0)
    k1, k2, k3 = jax.random.split(key, 3)

    N, C, H, W = 2, 4, 16, 16     # input
    O, g = 8, 4                   # DualConv(in_channels=4, out_channels=8, g=4)

    x = jax.random.normal(k1, (N, C, H, W), dtype=jnp.float32)
    w_gc = jax.random.normal(k2, (O, C // g, 3, 3), dtype=jnp.float32) * 0.1
    w_pwc = jax.random.normal(k3, (O, C, 1, 1), dtype=jnp.float32) * 0.1

    for stride in (1, 2):
        ref = dual_conv_ref(x, w_gc, w_pwc, groups=g, stride=stride)

        # f32 storage path: tight check against the lax.conv reference.
        fwd32 = jax.jit(functools.partial(dual_conv, groups=g, stride=stride,
                                          compute_dtype=jnp.float32))
        out32 = jax.block_until_ready(fwd32(x, w_gc, w_pwc))
        assert out32.shape == ref.shape, (stride, out32.shape, ref.shape)
        assert jnp.allclose(out32, ref, atol=1e-4, rtol=1e-3), \
            f"f32 mismatch vs reference (stride={stride})"

        # Default bf16 storage path (f32 MXU accumulation): loose check.
        fwd16 = jax.jit(functools.partial(dual_conv, groups=g, stride=stride))
        out16 = jax.block_until_ready(fwd16(x, w_gc, w_pwc))
        assert out16.shape == ref.shape, (stride, out16.shape, ref.shape)
        assert jnp.allclose(out16, ref, atol=3e-2, rtol=3e-2), \
            f"bf16 mismatch vs reference (stride={stride})"

    print("KERNEL_OK")
</pallas_src>

<mosaic_0001>
module attributes {stable_mosaic.version = 11 : i64} {
  func.func @_dualconv_kernel(%arg0: i32, %arg1: memref<1x4x326xf32, #tpu.memory_space<vmem>>, %arg2: memref<8x36xf32, #tpu.memory_space<vmem>>, %arg3: memref<1x8x288xf32, #tpu.memory_space<vmem>>, %arg4: memref<36x288xf32, #tpu.memory_space<vmem>>) attributes {dimension_semantics = [#tpu.dimension_semantics<parallel>], iteration_bounds = array<i64: 2>, scalar_prefetch = 0 : i64, scratch_operands = 1 : i64, tpu.core_type = #tpu.core_type<tc>, window_params = [{transform_indices = @transform_0, window_bounds = array<i64: 1, 4, 326>}, {pipeline_mode = #tpu.pipeline_mode<synchronous>, transform_indices = @transform_1, window_bounds = array<i64: 8, 36>}, {transform_indices = @transform_2, window_bounds = array<i64: 1, 8, 288>}]} {
    %c0 = arith.constant 0 : index
    %c0_0 = arith.constant 0 : index
    %c0_1 = arith.constant 0 : index
    %0 = vector.load %arg1[%c0, %c0_0, %c0_1] : memref<1x4x326xf32, #tpu.memory_space<vmem>>, vector<1x4x288xf32>
    %1 = vector.shape_cast %0 : vector<1x4x288xf32> to vector<4x288xf32>
    %c0_2 = arith.constant 0 : index
    %c0_3 = arith.constant 0 : index
    %2 = vector.load %arg4[%c0_2, %c0_3] : memref<36x288xf32, #tpu.memory_space<vmem>>, vector<4x288xf32>
    tpu.vector_store %arg4[%c0_2, %c0_3], %1 {strides = array<i32>} : memref<36x288xf32, #tpu.memory_space<vmem>>, vector<4x288xf32>,
    %c0_4 = arith.constant 0 : index
    %c0_5 = arith.constant 0 : index
    %c1 = arith.constant 1 : index
    %3 = vector.load %arg1[%c0_4, %c0_5, %c1] : memref<1x4x326xf32, #tpu.memory_space<vmem>>, vector<1x4x288xf32>
    %4 = vector.shape_cast %3 : vector<1x4x288xf32> to vector<4x288xf32>
    %c4 = arith.constant 4 : index
    %c0_6 = arith.constant 0 : index
    %5 = vector.load %arg4[%c4, %c0_6] : memref<36x288xf32, #tpu.memory_space<vmem>>, vector<4x288xf32>
    tpu.vector_store %arg4[%c4, %c0_6], %4 {strides = array<i32>} : memref<36x288xf32, #tpu.memory_space<vmem>>, vector<4x288xf32>,
    %c0_7 = arith.constant 0 : index
    %c0_8 = arith.constant 0 : index
    %c2 = arith.constant 2 : index
    %6 = vector.load %arg1[%c0_7, %c0_8, %c2] : memref<1x4x326xf32, #tpu.memory_space<vmem>>, vector<1x4x288xf32>
    %7 = vector.shape_cast %6 : vector<1x4x288xf32> to vector<4x288xf32>
    %c8 = arith.constant 8 : index
    %c0_9 = arith.constant 0 : index
    %8 = vector.load %arg4[%c8, %c0_9] : memref<36x288xf32, #tpu.memory_space<vmem>>, vector<4x288xf32>
    tpu.vector_store %arg4[%c8, %c0_9], %7 {strides = array<i32>} : memref<36x288xf32, #tpu.memory_space<vmem>>, vector<4x288xf32>,
    %c0_10 = arith.constant 0 : index
    %c0_11 = arith.constant 0 : index
    %c18 = arith.constant 18 : index
    %9 = vector.load %arg1[%c0_10, %c0_11, %c18] : memref<1x4x326xf32, #tpu.memory_space<vmem>>, vector<1x4x288xf32>
    %10 = vector.shape_cast %9 : vector<1x4x288xf32> to vector<4x288xf32>
    %c12 = arith.constant 12 : index
    %c0_12 = arith.constant 0 : index
    %11 = vector.load %arg4[%c12, %c0_12] : memref<36x288xf32, #tpu.memory_space<vmem>>, vector<4x288xf32>
    tpu.vector_store %arg4[%c12, %c0_12], %10 {strides = array<i32>} : memref<36x288xf32, #tpu.memory_space<vmem>>, vector<4x288xf32>,
    %c0_13 = arith.constant 0 : index
    %c0_14 = arith.constant 0 : index
    %c19 = arith.constant 19 : index
    %12 = vector.load %arg1[%c0_13, %c0_14, %c19] : memref<1x4x326xf32, #tpu.memory_space<vmem>>, vector<1x4x288xf32>
    %13 = vector.shape_cast %12 : vector<1x4x288xf32> to vector<4x288xf32>
    %c16 = arith.constant 16 : index
    %c0_15 = arith.constant 0 : index
    %14 = vector.load %arg4[%c16, %c0_15] : memref<36x288xf32, #tpu.memory_space<vmem>>, vector<4x288xf32>
    tpu.vector_store %arg4[%c16, %c0_15], %13 {strides = array<i32>} : memref<36x288xf32, #tpu.memory_space<vmem>>, vector<4x288xf32>,
    %c0_16 = arith.constant 0 : index
    %c0_17 = arith.constant 0 : index
    %c20 = arith.constant 20 : index
    %15 = vector.load %arg1[%c0_16, %c0_17, %c20] : memref<1x4x326xf32, #tpu.memory_space<vmem>>, vector<1x4x288xf32>
    %16 = vector.shape_cast %15 : vector<1x4x288xf32> to vector<4x288xf32>
    %c20_18 = arith.constant 20 : index
    %c0_19 = arith.constant 0 : index
    %17 = vector.load %arg4[%c20_18, %c0_19] : memref<36x288xf32, #tpu.memory_space<vmem>>, vector<4x288xf32>
    tpu.vector_store %arg4[%c20_18, %c0_19], %16 {strides = array<i32>} : memref<36x288xf32, #tpu.memory_space<vmem>>, vector<4x288xf32>,
    %c0_20 = arith.constant 0 : index
    %c0_21 = arith.constant 0 : index
    %c36 = arith.constant 36 : index
    %18 = vector.load %arg1[%c0_20, %c0_21, %c36] : memref<1x4x326xf32, #tpu.memory_space<vmem>>, vector<1x4x288xf32>
    %19 = vector.shape_cast %18 : vector<1x4x288xf32> to vector<4x288xf32>
    %c24 = arith.constant 24 : index
    %c0_22 = arith.constant 0 : index
    %20 = vector.load %arg4[%c24, %c0_22] : memref<36x288xf32, #tpu.memory_space<vmem>>, vector<4x288xf32>
    tpu.vector_store %arg4[%c24, %c0_22], %19 {strides = array<i32>} : memref<36x288xf32, #tpu.memory_space<vmem>>, vector<4x288xf32>,
    %c0_23 = arith.constant 0 : index
    %c0_24 = arith.constant 0 : index
    %c37 = arith.constant 37 : index
    %21 = vector.load %arg1[%c0_23, %c0_24, %c37] : memref<1x4x326xf32, #tpu.memory_space<vmem>>, vector<1x4x288xf32>
    %22 = vector.shape_cast %21 : vector<1x4x288xf32> to vector<4x288xf32>
    %c28 = arith.constant 28 : index
    %c0_25 = arith.constant 0 : index
    %23 = vector.load %arg4[%c28, %c0_25] : memref<36x288xf32, #tpu.memory_space<vmem>>, vector<4x288xf32>
    tpu.vector_store %arg4[%c28, %c0_25], %22 {strides = array<i32>} : memref<36x288xf32, #tpu.memory_space<vmem>>, vector<4x288xf32>,
    %c0_26 = arith.constant 0 : index
    %c0_27 = arith.constant 0 : index
    %c38 = arith.constant 38 : index
    %24 = vector.load %arg1[%c0_26, %c0_27, %c38] : memref<1x4x326xf32, #tpu.memory_space<vmem>>, vector<1x4x288xf32>
    %25 = vector.shape_cast %24 : vector<1x4x288xf32> to vector<4x288xf32>
    %c32 = arith.constant 32 : index
    %c0_28 = arith.constant 0 : index
    %26 = vector.load %arg4[%c32, %c0_28] : memref<36x288xf32, #tpu.memory_space<vmem>>, vector<4x288xf32>
    tpu.vector_store %arg4[%c32, %c0_28], %25 {strides = array<i32>} : memref<36x288xf32, #tpu.memory_space<vmem>>, vector<4x288xf32>,
    %c0_29 = arith.constant 0 : index
    %c0_30 = arith.constant 0 : index
    %27 = vector.load %arg2[%c0_29, %c0_30] : memref<8x36xf32, #tpu.memory_space<vmem>>, vector<8x36xf32>
    %c0_31 = arith.constant 0 : index
    %c0_32 = arith.constant 0 : index
    %28 = vector.load %arg4[%c0_31, %c0_32] : memref<36x288xf32, #tpu.memory_space<vmem>>, vector<36x288xf32>
    %cst = arith.constant dense<0.000000e+00> : vector<8x288xf32>
    %29 = tpu.matmul %27, %28, %cst {dimension_numbers = #tpu.dot_dimension_numbers<[1], [0], [0], [1], [0, 0, 1, 1], [], []>} : vector<8x36xf32>, vector<36x288xf32>, vector<8x288xf32> -> vector<8x288xf32>
    %30 = vector.shape_cast %29 : vector<8x288xf32> to vector<1x8x288xf32>
    %c0_33 = arith.constant 0 : index
    %c0_34 = arith.constant 0 : index
    %c0_35 = arith.constant 0 : index
    %31 = vector.load %arg3[%c0_33, %c0_34, %c0_35] : memref<1x8x288xf32, #tpu.memory_space<vmem>>, vector<1x8x288xf32>
    tpu.vector_store %arg3[%c0_33, %c0_34, %c0_35], %30 {strides = array<i32>} : memref<1x8x288xf32, #tpu.memory_space<vmem>>, vector<1x8x288xf32>,
    return
  }
  func.func @transform_0(%arg0: i32) -> (i32, i32, i32) {
    %c0_i32 = arith.constant 0 : i32
    %c0_i32_0 = arith.constant 0 : i32
    %c0_i32_1 = arith.constant 0 : i32
    return %arg0, %c0_i32, %c0_i32_0 : i32, i32, i32
  }
  func.func @transform_1(%arg0: i32) -> (i32, i32) {
    %c0_i32 = arith.constant 0 : i32
    %c0_i32_0 = arith.constant 0 : i32
    %c0_i32_1 = arith.constant 0 : i32
    return %c0_i32, %c0_i32_0 : i32, i32
  }
  func.func @transform_2(%arg0: i32) -> (i32, i32, i32) {
    %c0_i32 = arith.constant 0 : i32
    %c0_i32_0 = arith.constant 0 : i32
    %c0_i32_1 = arith.constant 0 : i32
    return %arg0, %c0_i32, %c0_i32_0 : i32, i32, i32
  }
}

</mosaic_0001>

<bundles_post_ra>
// kernel: dual_conv.1
= control target key start
LH: loop header
LB: loop body
LE: loop exit
PB: predicated region body
PF: predicated region fallthrough
CT: control target
= control target key end

     0   :  { %s579_s9 = smov 0   ;;  %s670_s0 = inlined_call_operand.vmem [shape: f32[2,4,326], index: 0, kind: input, shape index: {}]   ;;  %s671_s1 = inlined_call_operand.vmem [shape: f32[8,36], index: 1, kind: input, shape index: {}]   ;;  %s672_s2 = inlined_call_operand.vmem [shape: f32[2,8,288], index: 2, kind: output, shape index: {}]  }
   0x1 LB: > { %s515_s10 = sadd.s32 4294967295, %s554_s9   ;;  %p519_p0 = scmp.ge.s32.totalorder %s554_s9, 1  ;;  %s554_s9 = sphi %s579_s9, %s12_s9  }
   0x2   : > { %p112_p1 = scmp.lt.s32.totalorder %s554_s9, 3 }
   0x4   : > { %p113_p2 = pnand %p519_p0, %p112_p1 }
   0x5   : > { %p134_p3 = scmp.lt.s32.totalorder (!%p113_p2), %s515_s10, 1  ;;  %s556_s15 = smov (!%p113_p2), 127  }
   0x6   : > { %116 = sbr.rel (%p113_p2) target bundleno = 367 (0x16f), region = 28  ;;  %s557_s16 = smov (!%p113_p2), 126  }
   0x7   : > { %s558_s17 = smov (!%p113_p2), 110   ;;  %s559_s18 = smov (!%p113_p2), 109  }
   0x8   : > { %s560_s19 = smov (!%p113_p2), 108   ;;  %s561_s20 = smov (!%p113_p2), 92  }
   0x9   : > { %s562_s21 = smov (!%p113_p2), 91   ;;  %s563_s22 = smov (!%p113_p2), 90  }
   0xb   : > { %s674_s10 = smov (!%p134_p3, %s515_s10), 1  ;;  %vm159_vm0 = vcmask 257024   ;;  %vm186_vm1 = vcmask 261124   ;;  %vm281_vm2 = vcmask 883712   ;;  %vm255_vm3 = vcmask 891904  }
   0xc   : > { %s530_s11 = smul.u32 12, %s674_s10  ;;  %vm306_vm4 = vcmask 752640   ;;  %vm178_vm5 = vcmask 1039360   ;;  %vm332_vm6 = vcmask 744448   ;;  %vm204_vm7 = vcmask 1031168  }
   0xd   : > { %vm357_vm8 = vcmask 736256   ;;  %vm386_vm9 = vcmask 1043456   ;;  %vm230_vm10 = vcmask 900096   ;;  %vm382_vm11 = vcmask 293888   ;;  %s531_s25 = smul.u32 24, %s674_s10 }
   0xe   : > { %s593_s14 = scalar_lea.vmem %s670_s0, %s530_s11  ;;  %vm458_vm12 = vcmask 261120  }
   0xf   : > { %v145_v0 = vld [vmem:[%s593_s14 + $0x8] sm:$0xf]  ;;  %v597_v1 = vld [vmem:[%s593_s14] sm:$0xff]  ;;  %s143_s28 = scalar_lea.vmem %s672_s2, %s531_s25 }
  0x10   : > { %150 = vst [vmem:[#allocation1 + $0x10] ss:$2 sm:$0xff] %v145_v0  ;;  %v162_v2 = vld [vmem:[%s593_s14 + $0x8] sm:$0xf] }
  0x11   : > { %148 = vst [vmem:[#allocation1] ss:$2 sm:$0xff] %v597_v1  ;;  %v189_v6 = vld [vmem:[%s593_s14 + $0x8] sm:$0xf] }
  0x12   : > { %v214_v10 = vld [vmem:[%s593_s14 + $0x8] sm:$0xf] }
  0x13   : > { %v240_v14 = vld [vmem:[%s593_s14 + $0x8] sm:$0xf] }
  0x14   : > { %v265_v18 = vld [vmem:[%s593_s14 + $0x8] sm:$0xf] }
  0x15   : > { %v291_v22 = vld [vmem:[%s593_s14 + $0x8] sm:$0xf] }
  0x16   : > { %v316_v26 = vld [vmem:[%s593_s14 + $0x8] sm:$0xf] }
  0x17   : > { %v601_v3 = vld.sshfl [vmem:[#allocation1 + $0x10] sm:$0xff pattern:$0x75316420]  ;;  %v342_v30 = vld [vmem:[%s593_s14 + $0x8] sm:$0xf] }
  0x18   : > { %168 = vst [vmem:[#allocation1 + $0x11] ss:$2 sm:$0xff] %v162_v2  ;;  %v151_v4 = vld.sshfl [vmem:[#allocation1] sm:$0xff pattern:$0x75316420] }
  0x19   : > { %v152_v5 = vld.sshfl [vmem:[#allocation1 + $0x8] sm:$0xff pattern:$0x75316420]  ;;  %157 = vst [vmem:[#allocation2] sm:$0xf] %v151_v4 }
  0x1a   : > { %166 = vst [vmem:[#allocation1 + $0x1] ss:$2 sm:$0xff] %v597_v1 }
  0x1b   : > { %158 = vst [vmem:[#allocation2 + $0x8] sm:$0xf] %v152_v5 }
  0x1c   : > { %160 = vst.msk [vmem:[#allocation2 + $0x10] sm:$0xf] %vm159_vm0, %v601_v3 }
  0x1f   : > { %v171_v7 = vld.sshfl [vmem:[#allocation1 + $0x10] sm:$0xff pattern:$0x75316420] }
  0x20   : > { %176 = vrot.lane.b32.xlu1 %v171_v7, %s556_s15  ;;  %194 = vst [vmem:[#allocation1 + $0x10] ss:$2 sm:$0xff] %v189_v6 }
  0x21   : > { %v606_v8 = vld.sshfl [vmem:[#allocation1] sm:$0xff pattern:$0x75316420]  ;;  %v608_v9 = vld.sshfl [vmem:[#allocation1 + $0x8] sm:$0xff pattern:$0x75316420] }
  0x22   : > { %192 = vst [vmem:[#allocation1] ss:$2 sm:$0xff] %v597_v1 }
  0x27   : > { %v197_v11 = vld.sshfl [vmem:[#allocation1 + $0x10] sm:$0xff pattern:$0x75316420] }
  0x28   : > { %202 = vrot.lane.b32.xlu1 %v197_v11, %s557_s16  ;;  %220 = vst [vmem:[#allocation1 + $0x11] ss:$2 sm:$0xff] %v214_v10 }
  0x29   : > { %v195_v12 = vld.sshfl [vmem:[#allocation1] sm:$0xff pattern:$0x75316420]  ;;  %v196_v13 = vld.sshfl [vmem:[#allocation1 + $0x8] sm:$0xff pattern:$0x75316420] }
  0x2a   : > { %198 = vrot.lane.b32.xlu0 %v195_v12, %s557_s16  ;;  %218 = vst [vmem:[#allocation1 + $0x1] ss:$2 sm:$0xff] %v597_v1 }
  0x2f   : > { %v223_v15 = vld.sshfl [vmem:[#allocation1 + $0x10] sm:$0xff pattern:$0x75316420] }
  0x30   : > { %228 = vrot.lane.b32.xlu2 %v223_v15, %s558_s17  ;;  %245 = vst [vmem:[#allocation1 + $0x10] ss:$2 sm:$0xff] %v240_v14  ;;  %v366_v14 = vld [vmem:[%s671_s1] sm:$0xff] }
  0x31   : > { %v221_v16 = vld.sshfl [vmem:[#allocation1] sm:$0xff pattern:$0x75316420]  ;;  %v222_v17 = vld.sshfl [vmem:[#allocation1 + $0x8] sm:$0xff pattern:$0x75316420] }
  0x32   : > { %243 = vst [vmem:[#allocation1] ss:$2 sm:$0xff] %v597_v1 }
  0x37   : > { %v248_v19 = vld.sshfl [vmem:[#allocation1 + $0x10] sm:$0xff pattern:$0x75316420] }
  0x38   : > { %253 = vrot.lane.b32.xlu1 %v248_v19, %s559_s18  ;;  %271 = vst [vmem:[#allocation1 + $0x11] ss:$2 sm:$0xff] %v265_v18 }
  0x39   : > { %v246_v20 = vld.sshfl [vmem:[#allocation1] sm:$0xff pattern:$0x75316420]  ;;  %v247_v21 = vld.sshfl [vmem:[#allocation1 + $0x8] sm:$0xff pattern:$0x75316420] }
  0x3a   : > { %249 = vrot.lane.b32.xlu2 %v246_v20, %s559_s18  ;;  %251 = vrot.lane.b32.xlu0 %v247_v21, %s559_s18  ;;  %269 = vst [vmem:[#allocation1 + $0x1] ss:$2 sm:$0xff] %v597_v1 }
  0x3f   : > { %v274_v23 = vld.sshfl [vmem:[#allocation1 + $0x10] sm:$0xff pattern:$0x75316420] }
  0x40   : > { %296 = vst [vmem:[#allocation1 + $0x10] ss:$2 sm:$0xff] %v291_v22 }
  0x41   : > { %v272_v24 = vld.sshfl [vmem:[#allocation1] sm:$0xff pattern:$0x75316420]  ;;  %v273_v25 = vld.sshfl [vmem:[#allocation1 + $0x8] sm:$0xff pattern:$0x75316420] }
  0x42   : > { %279 = vrot.lane.b32.xlu2 %v274_v23, %s560_s19  ;;  %275 = vrot.lane.b32.xlu1 %v272_v24, %s560_s19  ;;  %294 = vst [vmem:[#allocation1] ss:$2 sm:$0xff] %v597_v1 }
  0x47   : > { %v299_v27 = vld.sshfl [vmem:[#allocation1 + $0x10] sm:$0xff pattern:$0x75316420] }
  0x48   : > { %322 = vst [vmem:[#allocation1 + $0x11] ss:$2 sm:$0xff] %v316_v26  ;;  %304 = vrot.lane.b32.xlu0 %v299_v27, %s561_s20 }
  0x49   : > { %v298_v28 = vld.sshfl [vmem:[#allocation1 + $0x8] sm:$0xff pattern:$0x75316420]  ;;  %v297_v29 = vld.sshfl [vmem:[#allocation1] sm:$0xff pattern:$0x75316420] }
  0x4a   : > { %277 = vrot.lane.b32.xlu2 %v273_v25, %s560_s19  ;;  %302 = vrot.lane.b32.xlu1 %v298_v28, %s561_s20  ;;  %320 = vst [vmem:[#allocation1 + $0x1] ss:$2 sm:$0xff] %v597_v1 }
  0x4f   : > { %v325_v31 = vld.sshfl [vmem:[#allocation1 + $0x10] sm:$0xff pattern:$0x75316420] }
  0x50   : > { %347 = vst [vmem:[#allocation1 + $0x10] ss:$2 sm:$0xff] %v342_v30  ;;  %300 = vrot.lane.b32.xlu0 %v297_v29, %s561_s20 }
  0x51   : > { %v324_v32 = vld.sshfl [vmem:[#allocation1 + $0x8] sm:$0xff pattern:$0x75316420]  ;;  %v323_v33 = vld.sshfl [vmem:[#allocation1] sm:$0xff pattern:$0x75316420] }
  0x52   : > { %224 = vrot.lane.b32.xlu2 %v221_v16, %s558_s17  ;;  %330 = vrot.lane.b32.xlu1 %v325_v31, %s562_s21  ;;  %345 = vst [vmem:[#allocation1] ss:$2 sm:$0xff] %v597_v1 }
  0x57   : > { %v350_v34 = vld.sshfl [vmem:[#allocation1 + $0x10] sm:$0xff pattern:$0x75316420] }
  0x58   : > { %328 = vrot.lane.b32.xlu0 %v324_v32, %s562_s21 }
  0x59   : > { %v348_v35 = vld.sshfl [vmem:[#allocation1] sm:$0xff pattern:$0x75316420]  ;;  %v349_v36 = vld.sshfl [vmem:[#allocation1 + $0x8] sm:$0xff pattern:$0x75316420] }
  0x5a   : > { %200 = vrot.lane.b32.xlu1 %v196_v13, %s557_s16  ;;  %326 = vrot.lane.b32.xlu2 %v323_v33, %s562_s21 }
  0x60   : > { %355 = vrot.lane.b32.xlu0 %v350_v34, %s563_s22 }
  0x62   : > { %351 = vrot.lane.b32.xlu2 %v348_v35, %s563_s22  ;;  %172 = vrot.lane.b32.xlu1 %v606_v8, %s556_s15 }
  0x68   : > { %353 = vrot.lane.b32.xlu0 %v349_v36, %s563_s22 }
  0x6a   : > { %174 = vrot.lane.b32.xlu2 %v608_v9, %s556_s15 }
  0x70   : > { %226 = vrot.lane.b32.xlu0 %v222_v17, %s558_s17 }
  0x8a   : > { %v635_v37 = vpop.permute.xlu2 %228 }
  0x8b   : > { %238 = vst.msk [vmem:[#allocation2 + $0x28] sm:$0xf0] %vm186_vm1, %v635_v37 }
  0x92   : > { %v177_v38 = vpop.permute.xlu1 %176 }
  0x93   : > { %187 = vst.msk [vmem:[#allocation2 + $0x10] sm:$0xf0] %vm186_vm1, %v177_v38 }
  0x94   : > { %v250_v39 = vpop.permute.xlu2 %249 }
  0x9a   : > { %v203_v40 = vpop.permute.xlu1 %202  ;;  %v369_v16 = vld [vmem:[#allocation2 + $0x10] sm:$0xff] }
  0x9b   : > { %212 = vst.msk [vmem:[#allocation2 + $0x28] sm:$0xf] %vm159_vm0, %v203_v40 }
  0x9c   : > { %v280_v41 = vpop.permute.xlu2 %279  ;;  %v199_v42 = vpop.permute.xlu0 %198 }
  0x9d   : > { %289 = vst.msk [vmem:[#allocation2 + $0x40] sm:$0xf0] %vm186_vm1, %v280_v41 }
  0xa2   : > { %v372_v13 = vld [vmem:[#allocation2 + $0x28] sm:$0xff] }
  0xa4   : > { %v278_v43 = vpop.permute.xlu2 %277 }
  0xa5   : > { %v283_v44 = vsel %vm281_vm2, %v278_v43, %v280_v41 }
  0xa6   : > { %288 = vst [vmem:[#allocation2 + $0x38] sm:$0xf0] %v283_v44 }
  0xaa   : > { %v254_v45 = vpop.permute.xlu1 %253 }
  0xab   : > { %263 = vst.msk [vmem:[#allocation2 + $0x40] sm:$0xf] %vm159_vm0, %v254_v45 }
  0xac   : > { %v644_v46 = vpop.permute.xlu2 %224  ;;  %v252_v47 = vpop.permute.xlu0 %251 }
  0xad   : > { %v256_v48 = vsel %vm255_vm3, %v250_v39, %v252_v47  ;;  %v257_v49 = vsel %vm255_vm3, %v252_v47, %v254_v45 }
  0xae   : > { %261 = vst [vmem:[#allocation2 + $0x30] sm:$0xf] %v256_v48 }
  0xaf   : > { %262 = vst [vmem:[#allocation2 + $0x38] sm:$0xf] %v257_v49 }
  0xb2   : > { %v375_v12 = vld [vmem:[#allocation2 + $0x40] sm:$0xff] }
  0xb4   : > { %v276_v50 = vpop.permute.xlu1 %275  ;;  %v327_v51 = vpop.permute.xlu2 %326 }
  0xb5   : > { %v282_v52 = vsel %vm281_vm2, %v276_v50, %v278_v43 }
  0xb6   : > { %287 = vst [vmem:[#allocation2 + $0x30] sm:$0xf0] %v282_v52  ;;  %v374_v24 = vld [vmem:[#allocation2 + $0x38] sm:$0xff] }
  0xba   : > { %v305_v53 = vpop.permute.xlu0 %304 }
  0xbb   : > { %314 = vst.msk [vmem:[#allocation2 + $0x58] sm:$0xf] %vm159_vm0, %v305_v53 }
  0xbc   : > { %v303_v54 = vpop.permute.xlu1 %302  ;;  %v352_v55 = vpop.permute.xlu2 %351 }
  0xbd   : > { %v308_v56 = vsel %vm306_vm4, %v303_v54, %v305_v53  ;;  %v373_v23 = vld [vmem:[#allocation2 + $0x30] sm:$0xff] }
  0xbe   : > { %313 = vst [vmem:[#allocation2 + $0x50] sm:$0xf] %v308_v56 }
  0xc2   : > { %v301_v57 = vpop.permute.xlu0 %300 }
  0xc3   : > { %v307_v58 = vsel %vm306_vm4, %v301_v57, %v303_v54 }
  0xc4   : > { %v331_v59 = vpop.permute.xlu1 %330  ;;  %312 = vst [vmem:[#allocation2 + $0x48] sm:$0xf] %v307_v58  ;;  %v175_v60 = vpop.permute.xlu2 %174 }
  0xc5   : > { %340 = vst.msk [vmem:[#allocation2 + $0x58] sm:$0xf0] %vm186_vm1, %v331_v59  ;;  %v180_v61 = vsel %vm178_vm5, %v175_v60, %v177_v38 }
  0xc6   : > { %185 = vst [vmem:[#allocation2 + $0x8] sm:$0xf0] %v180_v61 }
  0xca   : > { %v329_v62 = vpop.permute.xlu0 %328 }
  0xcb   : > { %v333_v63 = vsel %vm332_vm6, %v327_v51, %v329_v62  ;;  %v334_v0 = vsel %vm332_vm6, %v329_v62, %v331_v59 }
  0xcc   : > { %v201_v1 = vpop.permute.xlu1 %200  ;;  %338 = vst [vmem:[#allocation2 + $0x48] sm:$0xf0] %v333_v63  ;;  %v378_v11 = vld [vmem:[#allocation2 + $0x58] sm:$0xff] }
  0xcd   : > { %v205_v2 = vsel %vm204_vm7, %v199_v42, %v201_v1  ;;  %v206_v3 = vsel %vm204_vm7, %v201_v1, %v203_v40  ;;  %339 = vst [vmem:[#allocation2 + $0x50] sm:$0xf0] %v334_v0  ;;  %v368_v28 = vld [vmem:[#allocation2 + $0x8] sm:$0xff] }
  0xce   : > { %210 = vst [vmem:[#allocation2 + $0x18] sm:$0xf] %v205_v2 }
  0xcf   : > { %211 = vst [vmem:[#allocation2 + $0x20] sm:$0xf] %v206_v3 }
  0xd2   : > { %v356_v4 = vpop.permute.xlu0 %355 }
  0xd3   : > { %365 = vst.msk [vmem:[#allocation2 + $0x70] sm:$0xf] %vm159_vm0, %v356_v4  ;;  %v376_v21 = vld [vmem:[#allocation2 + $0x48] sm:$0xff] }
  0xd4   : > { %v173_v5 = vpop.permute.xlu1 %172  ;;  %v377_v22 = vld [vmem:[#allocation2 + $0x50] sm:$0xff] }
  0xd5   : > { %v179_v6 = vsel %vm178_vm5, %v173_v5, %v175_v60 }
  0xd6   : > { %184 = vst [vmem:[#allocation2] sm:$0xf0] %v179_v6 }
  0xda   : > { %v354_v7 = vpop.permute.xlu0 %353  ;;  %v381_v8 = vld [vmem:[#allocation2 + $0x70] sm:$0xf] }
  0xdb   : > { %v358_v9 = vsel %vm357_vm8, %v352_v55, %v354_v7  ;;  %v359_v10 = vsel %vm357_vm8, %v354_v7, %v356_v4  ;;  %526 = vmatpush.msk.msra.mxu2 %vm386_vm9, %v381_v8 }
  0xdc   : > { %363 = vst [vmem:[#allocation2 + $0x60] sm:$0xf] %v358_v9 }
  0xdd   : > { %364 = vst [vmem:[#allocation2 + $0x68] sm:$0xf] %v359_v10  ;;  %448 = vmatpush.msra.mxu2 %v378_v11  ;;  %v367_v26 = vld [vmem:[#allocation2] sm:$0xff] }
  0xdf   : > { %449 = vmatpush.msra.mxu2 %v375_v12 }
  0xe1   : > { %450 = vmatpush.msra.mxu2 %v372_v13 }
  0xe2   : > { %v227_v15 = vpop.permute.xlu0 %226 }
  0xe3   : > { %v231_v17 = vsel %vm230_vm10, %v644_v46, %v227_v15  ;;  %v232_v18 = vsel %vm230_vm10, %v227_v15, %v635_v37  ;;  %451 = vmatpush.msra.mxu2 %v369_v16  ;;  %v379_v19 = vld [vmem:[#allocation2 + $0x60] sm:$0xf] }
  0xe4   : > { %236 = vst [vmem:[#allocation2 + $0x18] sm:$0xf0] %v231_v17  ;;  %522 = vmatpush.msk.msra.mxu0 %vm386_vm9, %v379_v19  ;;  %v380_v20 = vld [vmem:[#allocation2 + $0x68] sm:$0xf]  ;;  %527 = vmatmul.msk.f32.vlgmr.msra.gmra.mxu2 %vm382_vm11, %v366_v14 }
  0xe5   : > { %237 = vst [vmem:[#allocation2 + $0x20] sm:$0xf0] %v232_v18  ;;  %524 = vmatpush.msk.msra.mxu1 %vm386_vm9, %v380_v20 }
  0xe6   : > { %408 = vmatpush.msra.mxu0 %v376_v21 }
  0xe7   : > { %428 = vmatpush.msra.mxu1 %v377_v22 }
  0xe8   : > { %409 = vmatpush.msra.mxu0 %v373_v23 }
  0xe9   : > { %429 = vmatpush.msra.mxu1 %v374_v24 }
  0xeb   : > { %v370_v25 = vld [vmem:[#allocation2 + $0x18] sm:$0xff] }
  0xec   : > { %410 = vmatpush.msra.mxu0 %v370_v25  ;;  %v371_v27 = vld [vmem:[#allocation2 + $0x20] sm:$0xff] }
  0xed   : > { %430 = vmatpush.msra.mxu1 %v371_v27 }
  0xee   : > { %411 = vmatpush.msra.mxu0 %v367_v26 }
  0xef   : > { %431 = vmatpush.msra.mxu1 %v368_v28  ;;  %523 = vmatmul.msk.f32.vlgmr.msra.gmra.mxu0 %vm382_vm11, %v366_v14 }
  0xf0   : > { %525 = vmatmul.msk.f32.vlgmr.msra.gmra.mxu1 %vm382_vm11, %v366_v14 }
 0x167   : > { %v453_v29 = vpop.f32.mrf.mxu2 }
 0x168   : > { %459 = vst.msk [vmem:[%s143_s28 + $0x10] sm:$0xff] %vm458_vm12, %v453_v29 }
 0x16c   : > { %v413_v30 = vpop.f32.mrf.mxu0 }
 0x16d   : > { %456 = vst [vmem:[%s143_s28] sm:$0xff] %v413_v30  ;;  %v433_v31 = vpop.f32.mrf.mxu1 }
 0x16e   : > { %457 = vst [vmem:[%s143_s28 + $0x8] sm:$0xff] %v433_v31 }
 0x16f PF: > { %s12_s9 = sadd.s32 1, %s554_s9  }
 0x170   : > { %p9_p4 = scmp.ge.s32.totalorder %s12_s9, 4  }
 0x172   :  { %11 = sbr.rel (!%p9_p4) target bundleno = 1 (0x1), region = 71 }

</bundles_post_ra>
